<compile_context>
chip_gen: v7x
topology: tpu7x:2x2x1
jax: 0.10.0
libtpu: 0.0.40
codegen_flags: <defaults>
</compile_context>

<pallas_src>
import functools

import jax
import jax.numpy as jnp
from jax.experimental import pallas as pl
from jax.experimental.pallas import tpu as pltpu

_LANE = 1024        # lane-dense last dim (large multiple of 128 -> unmasked vst)
_ROW_ALIGN = 32     # sublane alignment legal for f32 / bf16 / int8 blocks


# ----------------------------------------------------------------------------
# Layout helpers: flatten arbitrary state shape into a (rows, _LANE) slab.
# ----------------------------------------------------------------------------
def _round_up(x, m):
    return ((x + m - 1) // m) * m


@functools.lru_cache(maxsize=1)
def _default_min_row_blocks():
    """Ask for >=2 row blocks on 2-TensorCore chips (v7x) so both cores get work."""
    try:
        kind = jax.devices()[0].device_kind.lower()
        if "v7" in kind:
            return 2
    except Exception:
        pass
    return 1


def _layout(total, tile_rows_max, min_row_blocks):
    rows = _round_up(pl.cdiv(total, _LANE), _ROW_ALIGN)
    tile_rows = min(_round_up(tile_rows_max, _ROW_ALIGN), rows)
    if min_row_blocks > 1:
        cap = (rows // min_row_blocks) // _ROW_ALIGN * _ROW_ALIGN
        if cap >= _ROW_ALIGN:                      # only split if blocks stay aligned
            tile_rows = min(tile_rows, cap)
    rows = _round_up(rows, tile_rows)              # full blocks only
    return rows, tile_rows


def _pack(x, rows, dtype=None):
    """Flatten to (rows, _LANE); cast/pad only when actually needed."""
    flat = x.reshape(-1)
    if dtype is not None and flat.dtype != dtype:
        flat = flat.astype(dtype)
    pad = rows * _LANE - flat.shape[0]
    if pad:
        flat = jnp.pad(flat, (0, pad))
    return flat.reshape(rows, _LANE)


def _unpack(y, total, shape):
    flat = y.reshape(-1)
    if flat.shape[0] != total:
        flat = flat[:total]
    return flat.reshape(shape)


# ----------------------------------------------------------------------------
# Single-step kernel (matches Resonator.forward exactly).
# ----------------------------------------------------------------------------
def _step_kernel(mem_r_ref, mem_i_ref, inp_ref,
                 spk_ref, new_r_ref, new_i_ref, *, a, b, c):
    mr = mem_r_ref[...]
    mi = mem_i_ref[...]
    x = inp_ref[...].astype(jnp.float32)                      # in-kernel cast (free VPU)
    new_i = b * mr + a * mi                                   # imag of updated mem
    spike = new_i > 0.0                                       # Heaviside(mem.imag)
    new_r = jnp.where(spike, 0.0, a * mr - b * mi + c * x)    # real part, reset on spike
    spk_ref[...] = spike.astype(spk_ref.dtype)
    new_r_ref[...] = new_r
    new_i_ref[...] = new_i


def resonator_forward(mem_r, mem_i, inp, beta, freq, dt, *,
                      tile_rows=512, spk_dtype=jnp.float32, min_row_blocks=None):
    """One Resonator step.  Returns (spk, new_mem_r, new_mem_i), shaped like mem_r.

    NOTE: for a time loop prefer resonator_scan (3-8x less HBM traffic per step)."""
    shape = mem_r.shape
    total = mem_r.size
    if min_row_blocks is None:
        min_row_blocks = _default_min_row_blocks()
    rows, tr = _layout(total, tile_rows, min_row_blocks)

    # Fold module hyperparameters into compile-time constants.
    a = float(1.0 + dt * beta)
    b = float(dt * freq)
    c = float(dt)

    block = pl.BlockSpec((tr, _LANE), lambda i: (i, 0))
    inp_p = _pack(inp, rows)                                   # keep native dtype

    spk, nr, ni = pl.pallas_call(
        functools.partial(_step_kernel, a=a, b=b, c=c),
        out_shape=(
            jax.ShapeDtypeStruct((rows, _LANE), spk_dtype),
            jax.ShapeDtypeStruct((rows, _LANE), jnp.float32),
            jax.ShapeDtypeStruct((rows, _LANE), jnp.float32),
        ),
        grid=(rows // tr,),
        in_specs=[block, block, block],
        out_specs=(block, block, block),
        input_output_aliases={0: 1, 1: 2},        # donate mem planes -> new mem planes
        compiler_params=pltpu.CompilerParams(
            dimension_semantics=("parallel",),
            vmem_limit_bytes=32 * 1024 * 1024),
    )(_pack(mem_r, rows, jnp.float32), _pack(mem_i, rows, jnp.float32), inp_p)

    return (_unpack(spk, total, shape),
            _unpack(nr, total, shape),
            _unpack(ni, total, shape))


# ----------------------------------------------------------------------------
# Fused time-loop kernel: membrane state resident in the output VMEM blocks.
# ----------------------------------------------------------------------------
def _scan_kernel(mem_r_ref, mem_i_ref, inp_ref,
                 spk_ref, out_r_ref, out_i_ref, *, a, b, c):
    t = pl.program_id(1)

    @pl.when(t == 0)
    def _():                                       # seed resident state from inputs
        out_r_ref[...] = mem_r_ref[...]
        out_i_ref[...] = mem_i_ref[...]

    mr = out_r_ref[...]                            # output block index is constant over
    mi = out_i_ref[...]                            # t -> stays in VMEM, written back once
    x = inp_ref[...].astype(jnp.float32)
    new_i = b * mr + a * mi
    spike = new_i > 0.0
    new_r = jnp.where(spike, 0.0, a * mr - b * mi + c * x)

    spk_ref[...] = spike.astype(spk_ref.dtype)
    out_r_ref[...] = new_r
    out_i_ref[...] = new_i


def resonator_scan(mem_r, mem_i, inp_seq, beta, freq, dt, *,
                   tile_rows=512, spk_dtype=jnp.int8, inp_dtype=None,
                   min_row_blocks=None, inp_buffers=2):
    """Run T Resonator steps with the membrane state kept in VMEM.

    inp_seq: (T, *state_shape).  Returns (spk_seq (T, *state), mem_r_T, mem_i_T).
    spk is int8 (exactly 0/1, lossless) by default; pass spk_dtype=jnp.float32 for the
    PyTorch-style float spike tensor.  Pass bf16 inputs (or inp_dtype=jnp.bfloat16) to
    halve the dominant per-step HBM read."""
    T = inp_seq.shape[0]
    shape = mem_r.shape
    total = mem_r.size
    if min_row_blocks is None:
        min_row_blocks = _default_min_row_blocks()
    rows, tr = _layout(total, tile_rows, min_row_blocks)

    a = float(1.0 + dt * beta)
    b = float(dt * freq)
    c = float(dt)

    flat = inp_seq.reshape(T, -1)
    if inp_dtype is not None and flat.dtype != inp_dtype:
        flat = flat.astype(inp_dtype)
    pad = rows * _LANE - flat.shape[1]
    if pad:
        flat = jnp.pad(flat, ((0, 0), (0, pad)))
    inp_p = flat.reshape(T, rows, _LANE)

    state_block = pl.BlockSpec((tr, _LANE), lambda r, t: (r, 0))       # constant over t
    seq_map = lambda r, t: (t, r, 0)
    if inp_buffers and inp_buffers != 2:
        # Optional deeper pipeline for very short per-step DMAs (v7x, xprof-confirmed).
        inp_block = pl.BlockSpec((None, tr, _LANE), seq_map,
                                 pipeline_mode=pl.Buffered(inp_buffers))
    else:
        inp_block = pl.BlockSpec((None, tr, _LANE), seq_map)
    spk_block = pl.BlockSpec((None, tr, _LANE), seq_map)

    spk, fr, fi = pl.pallas_call(
        functools.partial(_scan_kernel, a=a, b=b, c=c),
        out_shape=(
            jax.ShapeDtypeStruct((T, rows, _LANE), spk_dtype),
            jax.ShapeDtypeStruct((rows, _LANE), jnp.float32),
            jax.ShapeDtypeStruct((rows, _LANE), jnp.float32),
        ),
        grid=(rows // tr, T),                      # time axis innermost, state resident
        in_specs=[state_block, state_block, inp_block],
        out_specs=(spk_block, state_block, state_block),
        compiler_params=pltpu.CompilerParams(
            dimension_semantics=("parallel", "arbitrary"),
            vmem_limit_bytes=32 * 1024 * 1024),
    )(_pack(mem_r, rows, jnp.float32), _pack(mem_i, rows, jnp.float32), inp_p)

    spk_flat = spk.reshape(T, rows * _LANE)
    if rows * _LANE != total:
        spk_flat = spk_flat[:, :total]
    spk_seq = spk_flat.reshape((T,) + shape)
    return spk_seq, _unpack(fr, total, shape), _unpack(fi, total, shape)


# ----------------------------------------------------------------------------
# Plain-JAX reference mirroring the PyTorch forward (complex math).
# ----------------------------------------------------------------------------
def resonator_reference(mem_r, mem_i, inp, beta, freq, dt):
    mem = (mem_r + 1j * mem_i).astype(jnp.complex64)
    params = jnp.complex64(beta + 1j * freq)
    mem = mem + dt * (params * mem + inp.astype(jnp.complex64))
    spk = (jnp.imag(mem) > 0.0).astype(jnp.float32)
    new_r = jnp.real(mem) * (1.0 - spk)
    return spk, new_r, jnp.imag(mem)


if __name__ == "__main__":
    beta, freq, dt, rest = -0.5, 10.0, 0.01, 0.0
    B, D, T = 8, 256, 8

    key = jax.random.PRNGKey(0)
    k_inp, k_pert, k_seq = jax.random.split(key, 3)

    mem_r0 = jnp.full((B, D), rest, dtype=jnp.float32)
    mem_i0 = 0.1 * jax.random.normal(k_pert, (B, D), dtype=jnp.float32)
    inp = jax.random.normal(k_inp, (B, D), dtype=jnp.float32)

    # --- single-step kernel vs. complex-math reference -------------------------------
    spk, nr, ni = resonator_forward(mem_r0, mem_i0, inp, beta, freq, dt)
    jax.block_until_ready((spk, nr, ni))

    spk_ref, r_ref, i_ref = resonator_reference(mem_r0, mem_i0, inp, beta, freq, dt)
    # Elements whose imag part sits at the Heaviside boundary may flip under an
    # equivalent-but-reordered f32 computation; exclude them from the hard check.
    boundary = jnp.abs(i_ref) < 1e-5
    assert bool(jnp.all((spk == spk_ref) | boundary)), "spike mismatch"
    assert bool(jnp.all(jnp.abs(ni - i_ref) < 1e-5)), "mem.imag mismatch"
    assert bool(jnp.all((jnp.abs(nr - r_ref) < 1e-5) | boundary)), "mem.real mismatch"

    # --- fused time-loop kernel vs. chained single-step kernel ------------------------
    inp_seq = jax.random.normal(k_seq, (T, B, D), dtype=jnp.float32)
    spk_seq, fr, fi = resonator_scan(mem_r0, mem_i0, inp_seq, beta, freq, dt)
    jax.block_until_ready((spk_seq, fr, fi))

    mr, mi = mem_r0, mem_i0
    spk_chain = []
    for t in range(T):
        s_t, mr, mi = resonator_forward(mr, mi, inp_seq[t], beta, freq, dt)
        spk_chain.append(s_t)
    spk_chain = jnp.stack(spk_chain)

    assert bool(jnp.all(spk_seq.astype(jnp.float32) == spk_chain)), "fused-scan spike mismatch"
    assert bool(jnp.allclose(fr, mr, atol=1e-6)), "fused-scan mem.real mismatch"
    assert bool(jnp.allclose(fi, mi, atol=1e-6)), "fused-scan mem.imag mismatch"

    # --- low-bandwidth variant (bf16 input stream) compiles and runs ------------------
    spk_b, fr_b, fi_b = resonator_scan(mem_r0, mem_i0, inp_seq, beta, freq, dt,
                                       inp_dtype=jnp.bfloat16)
    jax.block_until_ready((spk_b, fr_b, fi_b))
    assert bool(jnp.all(jnp.isfinite(fr_b))) and bool(jnp.all(jnp.isfinite(fi_b)))

    print("KERNEL_OK")
</pallas_src>

<mosaic_0001>
module attributes {stable_mosaic.version = 11 : i64} {
  func.func @_step_kernel(%arg0: i32, %arg1: memref<32x1024xf32, #tpu.memory_space<vmem>>, %arg2: memref<32x1024xf32, #tpu.memory_space<vmem>>, %arg3: memref<32x1024xf32, #tpu.memory_space<vmem>>, %arg4: memref<32x1024xf32, #tpu.memory_space<vmem>>, %arg5: memref<32x1024xf32, #tpu.memory_space<vmem>>, %arg6: memref<32x1024xf32, #tpu.memory_space<vmem>>) attributes {dimension_semantics = [#tpu.dimension_semantics<parallel>], iteration_bounds = array<i64: 1>, scalar_prefetch = 0 : i64, scratch_operands = 0 : i64, tpu.core_type = #tpu.core_type<tc>, window_params = [{transform_indices = @transform_0, window_bounds = array<i64: 32, 1024>}, {transform_indices = @transform_1, window_bounds = array<i64: 32, 1024>}, {transform_indices = @transform_2, window_bounds = array<i64: 32, 1024>}, {transform_indices = @transform_3, window_bounds = array<i64: 32, 1024>}, {transform_indices = @transform_4, window_bounds = array<i64: 32, 1024>}, {transform_indices = @transform_5, window_bounds = array<i64: 32, 1024>}]} {
    %c0 = arith.constant 0 : index
    %c0_0 = arith.constant 0 : index
    %0 = vector.load %arg1[%c0, %c0_0] : memref<32x1024xf32, #tpu.memory_space<vmem>>, vector<32x1024xf32>
    %c0_1 = arith.constant 0 : index
    %c0_2 = arith.constant 0 : index
    %1 = vector.load %arg2[%c0_1, %c0_2] : memref<32x1024xf32, #tpu.memory_space<vmem>>, vector<32x1024xf32>
    %c0_3 = arith.constant 0 : index
    %c0_4 = arith.constant 0 : index
    %2 = vector.load %arg3[%c0_3, %c0_4] : memref<32x1024xf32, #tpu.memory_space<vmem>>, vector<32x1024xf32>
    %cst = arith.constant 1.000000e-01 : f32
    %3 = vector.broadcast %cst : f32 to vector<32x1024xf32>
    %4 = arith.mulf %3, %0 : vector<32x1024xf32>
    %cst_5 = arith.constant 9.950000e-01 : f32
    %5 = vector.broadcast %cst_5 : f32 to vector<32x1024xf32>
    %6 = arith.mulf %5, %1 : vector<32x1024xf32>
    %7 = arith.addf %4, %6 : vector<32x1024xf32>
    %cst_6 = arith.constant 0.000000e+00 : f32
    %8 = vector.broadcast %cst_6 : f32 to vector<32x1024xf32>
    %9 = arith.cmpf ogt, %7, %8 : vector<32x1024xf32>
    %cst_7 = arith.constant 9.950000e-01 : f32
    %10 = vector.broadcast %cst_7 : f32 to vector<32x1024xf32>
    %11 = arith.mulf %10, %0 : vector<32x1024xf32>
    %cst_8 = arith.constant 1.000000e-01 : f32
    %12 = vector.broadcast %cst_8 : f32 to vector<32x1024xf32>
    %13 = arith.mulf %12, %1 : vector<32x1024xf32>
    %14 = arith.subf %11, %13 : vector<32x1024xf32>
    %cst_9 = arith.constant 0.00999999977 : f32
    %15 = vector.broadcast %cst_9 : f32 to vector<32x1024xf32>
    %16 = arith.mulf %15, %2 : vector<32x1024xf32>
    %17 = arith.addf %14, %16 : vector<32x1024xf32>
    %cst_10 = arith.constant 0.000000e+00 : f32
    %18 = vector.broadcast %cst_10 : f32 to vector<32x1024xf32>
    %19 = arith.select %9, %18, %17 : vector<32x1024xi1>, vector<32x1024xf32>
    %20 = arith.extui %9 : vector<32x1024xi1> to vector<32x1024xi32>
    %21 = arith.sitofp %20 : vector<32x1024xi32> to vector<32x1024xf32>
    %c0_11 = arith.constant 0 : index
    %c0_12 = arith.constant 0 : index
    %22 = vector.load %arg4[%c0_11, %c0_12] : memref<32x1024xf32, #tpu.memory_space<vmem>>, vector<32x1024xf32>
    tpu.vector_store %arg4[%c0_11, %c0_12], %21 {strides = array<i32>} : memref<32x1024xf32, #tpu.memory_space<vmem>>, vector<32x1024xf32>,
    %c0_13 = arith.constant 0 : index
    %c0_14 = arith.constant 0 : index
    %23 = vector.load %arg5[%c0_13, %c0_14] : memref<32x1024xf32, #tpu.memory_space<vmem>>, vector<32x1024xf32>
    tpu.vector_store %arg5[%c0_13, %c0_14], %19 {strides = array<i32>} : memref<32x1024xf32, #tpu.memory_space<vmem>>, vector<32x1024xf32>,
    %c0_15 = arith.constant 0 : index
    %c0_16 = arith.constant 0 : index
    %24 = vector.load %arg6[%c0_15, %c0_16] : memref<32x1024xf32, #tpu.memory_space<vmem>>, vector<32x1024xf32>
    tpu.vector_store %arg6[%c0_15, %c0_16], %7 {strides = array<i32>} : memref<32x1024xf32, #tpu.memory_space<vmem>>, vector<32x1024xf32>,
    return
  }
  func.func @transform_0(%arg0: i32) -> (i32, i32) {
    %c0_i32 = arith.constant 0 : i32
    %c0_i32_0 = arith.constant 0 : i32
    return %arg0, %c0_i32 : i32, i32
  }
  func.func @transform_1(%arg0: i32) -> (i32, i32) {
    %c0_i32 = arith.constant 0 : i32
    %c0_i32_0 = arith.constant 0 : i32
    return %arg0, %c0_i32 : i32, i32
  }
  func.func @transform_2(%arg0: i32) -> (i32, i32) {
    %c0_i32 = arith.constant 0 : i32
    %c0_i32_0 = arith.constant 0 : i32
    return %arg0, %c0_i32 : i32, i32
  }
  func.func @transform_3(%arg0: i32) -> (i32, i32) {
    %c0_i32 = arith.constant 0 : i32
    %c0_i32_0 = arith.constant 0 : i32
    return %arg0, %c0_i32 : i32, i32
  }
  func.func @transform_4(%arg0: i32) -> (i32, i32) {
    %c0_i32 = arith.constant 0 : i32
    %c0_i32_0 = arith.constant 0 : i32
    return %arg0, %c0_i32 : i32, i32
  }
  func.func @transform_5(%arg0: i32) -> (i32, i32) {
    %c0_i32 = arith.constant 0 : i32
    %c0_i32_0 = arith.constant 0 : i32
    return %arg0, %c0_i32 : i32, i32
  }
}

</mosaic_0001>

<bundles_post_ra>
// kernel: tpu_custom_call.1
= control target key start
LH: loop header
LB: loop body
LE: loop exit
PB: predicated region body
PF: predicated region fallthrough
CT: control target
= control target key end

     0   :  { %11 = vsyncpa [#allocation3], 0  ;;  %s1344_s0 = inlined_call_operand.hbm [shape: f32[32,1024], index: 0, kind: input, shape index: {}, may-alias: {0,4}]   ;;  %s1345_s1 = inlined_call_operand.hbm [shape: f32[32,1024], index: 1, kind: input, shape index: {}, may-alias: {1,5}]   ;;  %s1346_s2 = inlined_call_operand.vmem [shape: f32[32,1024], index: 2, kind: input, shape index: {}]   ;;  %s1347_s3 = inlined_call_operand.hbm [shape: f32[32,1024], index: 3, kind: output, shape index: {0}]   ;;  %s1348_s4 = inlined_call_operand.hbm [shape: f32[32,1024], index: 4, kind: output, shape index: {1}, may-alias: {0,4}]   ;;  %s1349_s5 = inlined_call_operand.hbm [shape: f32[32,1024], index: 5, kind: output, shape index: {2}, may-alias: {1,5}]  }
   0x1   :  { %12 = vsyncpa [#allocation6], 0 }
   0x2   :  { %13 = vsyncpa [#allocation4], 0 }
   0x3   :  { %14 = vsyncpa [#allocation9], 0  ;;  %s830_s18 = smov [#allocation2]   ;;  %s712_s22 = scalar_lea.hbm %s1344_s0, 4096 }
   0x4   :  { %s20_s19 = sshll.u32 %s830_s18, 4  ;;  %p713_p0 = scmp.ne.s32.totalorder %s1344_s0, %s712_s22  ;;  %s21_s19 = int_to_ptr.vmem [resolvable:$true] %s20_s19 }
   0x5   :  { %p716_p1 = scmp.lt.u32.totalorder %s712_s22, %s1344_s0 }
   0x7   :  { %p718_p2 = pnand %p716_p1, %p713_p0 }
   0x9   :  { %721 = shalt.err (!%p718_p2)
}
   0xa   :  { %s722_s27 = scalar_lea.vmem %s21_s19, 4096  ;;  %p727_p4 = scmp.lt.s32.totalorder %s21_s19, %s21_s19 }
   0xb   :  { %p723_p3 = scmp.ne.s32.totalorder %s21_s19, %s722_s27  ;;  %p728_p5 = scmp.lt.s32.totalorder %s722_s27, %s722_s27 }
   0xd   :  { %p729_p6 = por %p728_p5, %p727_p4 }
   0xf   :  { %p730_p7 = pnand %p729_p6, %p723_p3 }
  0x11   :  { %733 = shalt.err (!%p730_p7)
}
  0x12   :  { %s831_s28 = smov 1024   ;;  %s832_s29 = smov 64  }
  0x13   :  { %26 = dma.hbm_to_vmem [thread:$0]  %s1344_s0, 4096, %s21_s19, [#allocation3], %s831_s28, %s831_s28, %s832_s29  }
  0x14   :  { %s833_s7 = smov [#allocation5]   ;;  %s734_s11 = scalar_lea.hbm %s1345_s1, 4096 }
  0x15   :  { %s32_s8 = sshll.u32 %s833_s7, 4  ;;  %p735_p8 = scmp.ne.s32.totalorder %s1345_s1, %s734_s11  ;;  %s33_s8 = int_to_ptr.vmem [resolvable:$true] %s32_s8 }
  0x16   :  { %p738_p9 = scmp.lt.u32.totalorder %s734_s11, %s1345_s1 }
  0x18   :  { %p740_p10 = pnand %p738_p9, %p735_p8 }
  0x1a   :  { %743 = shalt.err (!%p740_p10)
}
  0x1b   :  { %s744_s16 = scalar_lea.vmem %s33_s8, 4096  ;;  %p749_p12 = scmp.lt.s32.totalorder %s33_s8, %s33_s8 }
  0x1c   :  { %p745_p11 = scmp.ne.s32.totalorder %s33_s8, %s744_s16  ;;  %p750_p13 = scmp.lt.s32.totalorder %s744_s16, %s744_s16 }
  0x1e   :  { %p751_p0 = por %p750_p13, %p749_p12 }
  0x20   :  { %p752_p1 = pnand %p751_p0, %p745_p11 }
  0x22   :  { %755 = shalt.err (!%p752_p1)
}
  0x23   :  { %38 = dma.hbm_to_vmem [thread:$0]  %s1345_s1, 4096, %s33_s8, [#allocation6], %s831_s28, %s831_s28, %s832_s29  }
  0x24   :  { %822 = dma.done.wait [#allocation3], 4096  }
  0x25   :  { %823 = vsyncadd [#allocation3], 4294963200 }
  0x26   :  { %824 = dma.done.wait [#allocation6], 4096  }
  0x27   :  { %825 = vsyncadd [#allocation6], 4294963200  ;;  %v47_v0 = vld [vmem:[#allocation2] sm:$0xff]  ;;  %v48_v8 = vld [vmem:[#allocation2 + $0x8] sm:$0xff]  ;;  %s836_s9 = smov [#allocation10]   ;;  %s837_s11 = smov [#allocation7]  }
  0x28   :  { %v79_v1 = vld [vmem:[#allocation5] sm:$0xff]  ;;  %v143_v3 = vmul.f32 0.1, %v47_v0  ;;  %v271_v5 = vmul.f32 0.995, %v47_v0  ;;  %v80_v9 = vld [vmem:[#allocation5 + $0x8] sm:$0xff] }
  0x29   :  { %v111_v2 = vld [vmem:[%s1346_s2] sm:$0xff]  ;;  %v175_v4 = vmul.f32 0.995, %v79_v1  ;;  %v303_v6 = vmul.f32 0.1, %v79_v1  ;;  %v112_v11 = vld [vmem:[%s1346_s2 + $0x8] sm:$0xff] }
  0x2a   :  { %v367_v7 = vmul.f32 0.01, %v111_v2  ;;  %v144_v12 = vmul.f32 0.1, %v48_v8  ;;  %v176_v13 = vmul.f32 0.995, %v80_v9 }
  0x2b   :  { %v901_v10 = vadd.f32 %v175_v4, %v143_v3  ;;  %v49_v14 = vld [vmem:[#allocation2 + $0x10] sm:$0xff]  ;;  %v335_v15 = vsub.f32 %v271_v5, %v303_v6  ;;  %v272_v16 = vmul.f32 0.995, %v48_v8  ;;  %v304_v17 = vmul.f32 0.1, %v80_v9  ;;  %v50_v23 = vld [vmem:[#allocation2 + $0x18] sm:$0xff] }
  0x2c   :  { %v368_v18 = vmul.f32 0.01, %v112_v11  ;;  %v908_v19 = vadd.f32 %v176_v13, %v144_v12  ;;  %v81_v20 = vld [vmem:[#allocation5 + $0x10] sm:$0xff]  ;;  %v145_v22 = vmul.f32 0.1, %v49_v14  ;;  %v82_v28 = vld [vmem:[#allocation5 + $0x18] sm:$0xff] }
  0x2d   :  { %vm239_vm0 = vcmp.gt.f32.partialorder %v901_v10, 0.0  ;;  %591 = vst [vmem:[#allocation10] sm:$0xff] %v901_v10  ;;  %v113_v21 = vld [vmem:[%s1346_s2 + $0x10] sm:$0xff]  ;;  %v399_v24 = vadd.f32 %v367_v7, %v335_v15  ;;  %v336_v25 = vsub.f32 %v272_v16, %v304_v17  ;;  %v177_v26 = vmul.f32 0.995, %v81_v20  ;;  %v114_v29 = vld [vmem:[%s1346_s2 + $0x18] sm:$0xff] }
  0x2e   :  { %v273_v27 = vmul.f32 0.995, %v49_v14  ;;  %vm240_vm1 = vcmp.gt.f32.partialorder %v908_v19, 0.0  ;;  %592 = vst [vmem:[#allocation10 + $0x8] sm:$0xff] %v908_v19  ;;  %v305_v30 = vmul.f32 0.1, %v81_v20 }
  0x2f   :  { %v369_v31 = vmul.f32 0.01, %v113_v21  ;;  %v51_v32 = vld [vmem:[#allocation2 + $0x20] sm:$0xff]  ;;  %v431_v33 = vsel %vm239_vm0, 0.0, %v399_v24  ;;  %v400_v34 = vadd.f32 %v368_v18, %v336_v25  ;;  %v920_v35 = vadd.f32 %v177_v26, %v145_v22  ;;  %v52_v43 = vld [vmem:[#allocation2 + $0x28] sm:$0xff]  ;;  %v53_v53 = vld [vmem:[#allocation2 + $0x30] sm:$0xff] }
  0x30   :  { %v146_v36 = vmul.f32 0.1, %v50_v23  ;;  %v83_v37 = vld [vmem:[#allocation5 + $0x20] sm:$0xff]  ;;  %559 = vst [vmem:[#allocation8] sm:$0xff] %v431_v33  ;;  %v337_v39 = vsub.f32 %v273_v27, %v305_v30  ;;  %v178_v40 = vmul.f32 0.995, %v82_v28 }
  0x31   :  { %v115_v38 = vld [vmem:[%s1346_s2 + $0x20] sm:$0xff]  ;;  %v274_v41 = vmul.f32 0.995, %v50_v23  ;;  %v306_v42 = vmul.f32 0.1, %v82_v28  ;;  %v432_v44 = vsel %vm240_vm1, 0.0, %v400_v34 }
  0x32   :  { %vm241_vm2 = vcmp.gt.f32.partialorder %v920_v35, 0.0  ;;  %593 = vst [vmem:[#allocation10 + $0x10] sm:$0xff] %v920_v35  ;;  %v370_v45 = vmul.f32 0.01, %v114_v29  ;;  %v147_v46 = vmul.f32 0.1, %v51_v32  ;;  %v401_v47 = vadd.f32 %v369_v31, %v337_v39 }
  0x33   :  { %560 = vst [vmem:[#allocation8 + $0x8] sm:$0xff] %v432_v44  ;;  %v929_v48 = vadd.f32 %v178_v40, %v146_v36  ;;  %v338_v49 = vsub.f32 %v274_v41, %v306_v42  ;;  %v179_v50 = vmul.f32 0.995, %v83_v37  ;;  %v84_v51 = vld [vmem:[#allocation5 + $0x28] sm:$0xff]  ;;  %v275_v54 = vmul.f32 0.995, %v51_v32 }
  0x34   :  { %v116_v52 = vld [vmem:[%s1346_s2 + $0x28] sm:$0xff]  ;;  %v307_v55 = vmul.f32 0.1, %v83_v37  ;;  %v371_v56 = vmul.f32 0.01, %v115_v38  ;;  %v433_v57 = vsel %vm241_vm2, 0.0, %v401_v47 }
  0x35   :  { %vm242_vm3 = vcmp.gt.f32.partialorder %v929_v48, 0.0  ;;  %v402_v58 = vadd.f32 %v370_v45, %v338_v49  ;;  %594 = vst [vmem:[#allocation10 + $0x18] sm:$0xff] %v929_v48  ;;  %v938_v59 = vadd.f32 %v179_v50, %v147_v46  ;;  %v85_v60 = vld [vmem:[#allocation5 + $0x30] sm:$0xff]  ;;  %v54_v62 = vld [vmem:[#allocation2 + $0x38] sm:$0xff]  ;;  %561 = vst [vmem:[#allocation8 + $0x10] sm:$0xff] %v433_v57  ;;  %s652_s10 = sshll.u32 %s836_s9, 4  ;;  %s1233_s10 = int_to_ptr.vmem [resolvable:$true] %s652_s10 }
  0x36   :  { %v117_v61 = vld [vmem:[%s1346_s2 + $0x30] sm:$0xff]  ;;  %v339_v63 = vsub.f32 %v275_v54, %v307_v55  ;;  %v148_v0 = vmul.f32 0.1, %v52_v43  ;;  %v180_v1 = vmul.f32 0.995, %v84_v51  ;;  %v86_v11 = vld [vmem:[#allocation5 + $0x38] sm:$0xff] }
  0x37   :  { %v276_v2 = vmul.f32 0.995, %v52_v43  ;;  %v434_v3 = vsel %vm242_vm3, 0.0, %v402_v58  ;;  %vm243_vm4 = vcmp.gt.f32.partialorder %v938_v59, 0.0  ;;  %595 = vst [vmem:[#allocation10 + $0x20] sm:$0xff] %v938_v59  ;;  %v118_v12 = vld [vmem:[%s1346_s2 + $0x38] sm:$0xff] }
  0x38   :  { %v308_v4 = vmul.f32 0.1, %v84_v51  ;;  %v372_v5 = vmul.f32 0.01, %v116_v52  ;;  %562 = vst [vmem:[#allocation8 + $0x18] sm:$0xff] %v434_v3  ;;  %v403_v6 = vadd.f32 %v371_v56, %v339_v63  ;;  %v947_v7 = vadd.f32 %v180_v1, %v148_v0  ;;  %v55_v21 = vld [vmem:[#allocation2 + $0x40] sm:$0xff] }
  0x39   :  { %v149_v8 = vmul.f32 0.1, %v53_v53  ;;  %v181_v9 = vmul.f32 0.995, %v85_v60  ;;  %v277_v14 = vmul.f32 0.995, %v53_v53 }
  0x3a   :  { %v340_v13 = vsub.f32 %v276_v2, %v308_v4  ;;  %v309_v15 = vmul.f32 0.1, %v85_v60  ;;  %v373_v16 = vmul.f32 0.01, %v117_v61  ;;  %v435_v17 = vsel %vm243_vm4, 0.0, %v403_v6  ;;  %596 = vst [vmem:[#allocation10 + $0x28] sm:$0xff] %v947_v7 }
  0x3b   :  { %vm244_vm5 = vcmp.gt.f32.partialorder %v947_v7, 0.0  ;;  %v956_v18 = vadd.f32 %v181_v9, %v149_v8  ;;  %v150_v20 = vmul.f32 0.1, %v54_v62  ;;  %563 = vst [vmem:[#allocation8 + $0x20] sm:$0xff] %v435_v17  ;;  %v182_v24 = vmul.f32 0.995, %v86_v11 }
  0x3c   :  { %v404_v22 = vadd.f32 %v372_v5, %v340_v13  ;;  %v341_v23 = vsub.f32 %v277_v14, %v309_v15  ;;  %v278_v25 = vmul.f32 0.995, %v54_v62  ;;  %v87_v26 = vld [vmem:[#allocation5 + $0x40] sm:$0xff]  ;;  %v310_v28 = vmul.f32 0.1, %v86_v11  ;;  %v56_v30 = vld [vmem:[#allocation2 + $0x48] sm:$0xff] }
  0x3d   :  { %v119_v27 = vld [vmem:[%s1346_s2 + $0x40] sm:$0xff]  ;;  %vm245_vm6 = vcmp.gt.f32.partialorder %v956_v18, 0.0  ;;  %597 = vst [vmem:[#allocation10 + $0x30] sm:$0xff] %v956_v18  ;;  %v374_v29 = vmul.f32 0.01, %v118_v12  ;;  %v965_v33 = vadd.f32 %v182_v24, %v150_v20  ;;  %v88_v36 = vld [vmem:[#allocation5 + $0x48] sm:$0xff] }
  0x3e   :  { %v436_v31 = vsel %vm244_vm5, 0.0, %v404_v22  ;;  %v405_v32 = vadd.f32 %v373_v16, %v341_v23  ;;  %v151_v34 = vmul.f32 0.1, %v55_v21  ;;  %v120_v37 = vld [vmem:[%s1346_s2 + $0x48] sm:$0xff]  ;;  %v342_v38 = vsub.f32 %v278_v25, %v310_v28  ;;  %v57_v42 = vld [vmem:[#allocation2 + $0x50] sm:$0xff]  ;;  %v58_v53 = vld [vmem:[#allocation2 + $0x58] sm:$0xff] }
  0x3f   :  { %564 = vst [vmem:[#allocation8 + $0x28] sm:$0xff] %v436_v31  ;;  %v183_v39 = vmul.f32 0.995, %v87_v26  ;;  %v279_v40 = vmul.f32 0.995, %v55_v21  ;;  %vm246_vm7 = vcmp.gt.f32.partialorder %v965_v33, 0.0 }
  0x40   :  { %v311_v41 = vmul.f32 0.1, %v87_v26  ;;  %v437_v43 = vsel %vm245_vm6, 0.0, %v405_v32  ;;  %598 = vst [vmem:[#allocation10 + $0x38] sm:$0xff] %v965_v33  ;;  %v375_v44 = vmul.f32 0.01, %v119_v27  ;;  %v406_v46 = vadd.f32 %v374_v29, %v342_v38 }
  0x41   :  { %v152_v45 = vmul.f32 0.1, %v56_v30  ;;  %565 = vst [vmem:[#allocation8 + $0x30] sm:$0xff] %v437_v43  ;;  %v974_v47 = vadd.f32 %v183_v39, %v151_v34  ;;  %v184_v50 = vmul.f32 0.995, %v88_v36  ;;  %v89_v51 = vld [vmem:[#allocation5 + $0x50] sm:$0xff] }
  0x42   :  { %v343_v49 = vsub.f32 %v279_v40, %v311_v41  ;;  %v121_v52 = vld [vmem:[%s1346_s2 + $0x50] sm:$0xff]  ;;  %v280_v54 = vmul.f32 0.995, %v56_v30  ;;  %v312_v55 = vmul.f32 0.1, %v88_v36  ;;  %v438_v57 = vsel %vm246_vm7, 0.0, %v406_v46 }
  0x43   :  { %v376_v56 = vmul.f32 0.01, %v120_v37  ;;  %vm247_vm8 = vcmp.gt.f32.partialorder %v974_v47, 0.0  ;;  %599 = vst [vmem:[#allocation10 + $0x40] sm:$0xff] %v974_v47  ;;  %v983_v60 = vadd.f32 %v184_v50, %v152_v45  ;;  %v90_v61 = vld [vmem:[#allocation5 + $0x58] sm:$0xff]  ;;  %v59_v63 = vld [vmem:[#allocation2 + $0x60] sm:$0xff] }
  0x44   :  { %v407_v58 = vadd.f32 %v375_v44, %v343_v49  ;;  %v122_v62 = vld [vmem:[%s1346_s2 + $0x58] sm:$0xff]  ;;  %566 = vst [vmem:[#allocation8 + $0x38] sm:$0xff] %v438_v57  ;;  %v344_v0 = vsub.f32 %v280_v54, %v312_v55  ;;  %v153_v1 = vmul.f32 0.1, %v57_v42  ;;  %v185_v2 = vmul.f32 0.995, %v89_v51 }
  0x45   :  { %v281_v3 = vmul.f32 0.995, %v57_v42  ;;  %vm248_vm9 = vcmp.gt.f32.partialorder %v983_v60, 0.0  ;;  %600 = vst [vmem:[#allocation10 + $0x48] sm:$0xff] %v983_v60  ;;  %v313_v5 = vmul.f32 0.1, %v89_v51 }
  0x46   :  { %v439_v4 = vsel %vm247_vm8, 0.0, %v407_v58  ;;  %v377_v6 = vmul.f32 0.01, %v121_v52  ;;  %v408_v8 = vadd.f32 %v376_v56, %v344_v0  ;;  %v992_v9 = vadd.f32 %v185_v2, %v153_v1  ;;  %v91_v13 = vld [vmem:[#allocation5 + $0x60] sm:$0xff]  ;;  %v60_v24 = vld [vmem:[#allocation2 + $0x68] sm:$0xff]  ;;  %v61_v34 = vld [vmem:[#allocation2 + $0x70] sm:$0xff] }
  0x47   :  { %567 = vst [vmem:[#allocation8 + $0x40] sm:$0xff] %v439_v4  ;;  %v154_v11 = vmul.f32 0.1, %v58_v53  ;;  %v186_v12 = vmul.f32 0.995, %v90_v61  ;;  %v123_v14 = vld [vmem:[%s1346_s2 + $0x60] sm:$0xff]  ;;  %v345_v15 = vsub.f32 %v281_v3, %v313_v5 }
  0x48   :  { %v282_v16 = vmul.f32 0.995, %v58_v53  ;;  %v314_v17 = vmul.f32 0.1, %v90_v61  ;;  %v378_v20 = vmul.f32 0.01, %v122_v62 }
  0x49   :  { %v440_v21 = vsel %vm248_vm9, 0.0, %v408_v8  ;;  %vm249_vm10 = vcmp.gt.f32.partialorder %v992_v9, 0.0  ;;  %601 = vst [vmem:[#allocation10 + $0x50] sm:$0xff] %v992_v9  ;;  %v1001_v22 = vadd.f32 %v186_v12, %v154_v11  ;;  %v155_v23 = vmul.f32 0.1, %v59_v63  ;;  %v92_v29 = vld [vmem:[#allocation5 + $0x68] sm:$0xff] }
  0x4a   :  { %568 = vst [vmem:[#allocation8 + $0x48] sm:$0xff] %v440_v21  ;;  %v409_v25 = vadd.f32 %v377_v6, %v345_v15  ;;  %v346_v26 = vsub.f32 %v282_v16, %v314_v17  ;;  %v187_v27 = vmul.f32 0.995, %v91_v13  ;;  %v283_v28 = vmul.f32 0.995, %v59_v63  ;;  %v124_v30 = vld [vmem:[%s1346_s2 + $0x68] sm:$0xff] }
  0x4b   :  { %vm250_vm11 = vcmp.gt.f32.partialorder %v1001_v22, 0.0  ;;  %602 = vst [vmem:[#allocation10 + $0x58] sm:$0xff] %v1001_v22  ;;  %v315_v31 = vmul.f32 0.1, %v91_v13  ;;  %v379_v32 = vmul.f32 0.01, %v123_v14 }
  0x4c   :  { %v441_v36 = vsel %vm249_vm10, 0.0, %v409_v25  ;;  %v410_v37 = vadd.f32 %v378_v20, %v346_v26  ;;  %v1010_v38 = vadd.f32 %v187_v27, %v155_v23  ;;  %v156_v39 = vmul.f32 0.1, %v60_v24  ;;  %v93_v40 = vld [vmem:[#allocation5 + $0x70] sm:$0xff]  ;;  %v62_v46 = vld [vmem:[#allocation2 + $0x78] sm:$0xff]  ;;  %v63_v58 = vld [vmem:[#allocation2 + $0x80] sm:$0xff] }
  0x4d   :  { %v125_v41 = vld [vmem:[%s1346_s2 + $0x70] sm:$0xff]  ;;  %569 = vst [vmem:[#allocation8 + $0x50] sm:$0xff] %v441_v36  ;;  %v347_v42 = vsub.f32 %v283_v28, %v315_v31  ;;  %v188_v43 = vmul.f32 0.995, %v92_v29  ;;  %v284_v44 = vmul.f32 0.995, %v60_v24 }
  0x4e   :  { %v316_v45 = vmul.f32 0.1, %v92_v29  ;;  %v442_v49 = vsel %vm250_vm11, 0.0, %v410_v37  ;;  %vm251_vm12 = vcmp.gt.f32.partialorder %v1010_v38, 0.0  ;;  %603 = vst [vmem:[#allocation10 + $0x60] sm:$0xff] %v1010_v38  ;;  %v94_v56 = vld [vmem:[#allocation5 + $0x78] sm:$0xff] }
  0x4f   :  { %v380_v50 = vmul.f32 0.01, %v124_v30  ;;  %v157_v51 = vmul.f32 0.1, %v61_v34  ;;  %570 = vst [vmem:[#allocation8 + $0x58] sm:$0xff] %v442_v49  ;;  %v411_v52 = vadd.f32 %v379_v32, %v347_v42  ;;  %v1019_v53 = vadd.f32 %v188_v43, %v156_v39  ;;  %v126_v57 = vld [vmem:[%s1346_s2 + $0x78] sm:$0xff] }
  0x50   :  { %v348_v54 = vsub.f32 %v284_v44, %v316_v45  ;;  %v189_v55 = vmul.f32 0.995, %v93_v40  ;;  %v285_v61 = vmul.f32 0.995, %v61_v34  ;;  %v317_v62 = vmul.f32 0.1, %v93_v40 }
  0x51   :  { %v381_v63 = vmul.f32 0.01, %v125_v41  ;;  %v443_v0 = vsel %vm251_vm12, 0.0, %v411_v52  ;;  %vm1361_vm13 = vcmp.gt.f32.partialorder %v1019_v53, 0.0  ;;  %604 = vst [vmem:[#allocation10 + $0x68] sm:$0xff] %v1019_v53  ;;  %v95_v3 = vld [vmem:[#allocation5 + $0x80] sm:$0xff] }
  0x52   :  { %v412_v1 = vadd.f32 %v380_v50, %v348_v54  ;;  %v1028_v2 = vadd.f32 %v189_v55, %v157_v51  ;;  %v127_v4 = vld [vmem:[%s1346_s2 + $0x80] sm:$0xff]  ;;  %v64_v5 = vld [vmem:[#allocation2 + $0x88] sm:$0xff]  ;;  %571 = vst [vmem:[#allocation8 + $0x60] sm:$0xff] %v443_v0  ;;  %v349_v6 = vsub.f32 %v285_v61, %v317_v62  ;;  %v158_v8 = vmul.f32 0.1, %v62_v46  ;;  %v65_v32 = vld [vmem:[#allocation2 + $0x90] sm:$0xff] }
  0x53   :  { %v190_v11 = vmul.f32 0.995, %v94_v56  ;;  %v286_v12 = vmul.f32 0.995, %v62_v46  ;;  %v318_v14 = vmul.f32 0.1, %v94_v56 }
  0x54   :  { %v444_v13 = vsel %vm1361_vm13, 0.0, %v412_v1  ;;  %vm1350_vm14 = vcmp.gt.f32.partialorder %v1028_v2, 0.0  ;;  %605 = vst [vmem:[#allocation10 + $0x70] sm:$0xff] %v1028_v2  ;;  %v382_v15 = vmul.f32 0.01, %v126_v57  ;;  %v413_v16 = vadd.f32 %v381_v63, %v349_v6  ;;  %v96_v23 = vld [vmem:[#allocation5 + $0x88] sm:$0xff] }
  0x55   :  { %572 = vst [vmem:[#allocation8 + $0x68] sm:$0xff] %v444_v13  ;;  %v1037_v17 = vadd.f32 %v190_v11, %v158_v8  ;;  %v159_v20 = vmul.f32 0.1, %v63_v58  ;;  %v191_v21 = vmul.f32 0.995, %v95_v3  ;;  %v128_v24 = vld [vmem:[%s1346_s2 + $0x88] sm:$0xff]  ;;  %v350_v25 = vsub.f32 %v286_v12, %v318_v14 }
  0x56   :  { %v287_v26 = vmul.f32 0.995, %v63_v58  ;;  %v319_v27 = vmul.f32 0.1, %v95_v3  ;;  %v383_v28 = vmul.f32 0.01, %v127_v4 }
  0x57   :  { %v445_v29 = vsel %vm1350_vm14, 0.0, %v413_v16  ;;  %vm1351_vm15 = vcmp.gt.f32.partialorder %v1037_v17, 0.0  ;;  %606 = vst [vmem:[#allocation10 + $0x78] sm:$0xff] %v1037_v17  ;;  %v1046_v30 = vadd.f32 %v191_v21, %v159_v20  ;;  %v160_v31 = vmul.f32 0.1, %v64_v5  ;;  %v97_v40 = vld [vmem:[#allocation5 + $0x90] sm:$0xff] }
  0x58   :  { %573 = vst [vmem:[#allocation8 + $0x70] sm:$0xff] %v445_v29  ;;  %v414_v34 = vadd.f32 %v382_v15, %v350_v25  ;;  %v351_v36 = vsub.f32 %v287_v26, %v319_v27  ;;  %v192_v37 = vmul.f32 0.995, %v96_v23  ;;  %v288_v39 = vmul.f32 0.995, %v64_v5  ;;  %v129_v41 = vld [vmem:[%s1346_s2 + $0x90] sm:$0xff] }
  0x59   :  { %vm1352_vm14 = vcmp.gt.f32.partialorder %v1046_v30, 0.0  ;;  %607 = vst [vmem:[#allocation10 + $0x80] sm:$0xff] %v1046_v30  ;;  %v320_v42 = vmul.f32 0.1, %v96_v23  ;;  %v384_v43 = vmul.f32 0.01, %v128_v24 }
  0x5a   :  { %v66_v44 = vld [vmem:[#allocation2 + $0x98] sm:$0xff]  ;;  %v446_v45 = vsel %vm1351_vm15, 0.0, %v414_v34  ;;  %v415_v46 = vadd.f32 %v383_v28, %v351_v36  ;;  %v1055_v49 = vadd.f32 %v192_v37, %v160_v31  ;;  %v161_v50 = vmul.f32 0.1, %v65_v32  ;;  %v67_v58 = vld [vmem:[#allocation2 + $0xa0] sm:$0xff]  ;;  %v68_v8 = vld [vmem:[#allocation2 + $0xa8] sm:$0xff] }
  0x5b   :  { %v98_v51 = vld [vmem:[#allocation5 + $0x98] sm:$0xff]  ;;  %574 = vst [vmem:[#allocation8 + $0x78] sm:$0xff] %v446_v45  ;;  %v352_v54 = vsub.f32 %v288_v39, %v320_v42  ;;  %v193_v55 = vmul.f32 0.995, %v97_v40  ;;  %v289_v56 = vmul.f32 0.995, %v65_v32 }
  0x5c   :  { %v130_v52 = vld [vmem:[%s1346_s2 + $0x98] sm:$0xff]  ;;  %v321_v57 = vmul.f32 0.1, %v97_v40  ;;  %v447_v61 = vsel %vm1352_vm14, 0.0, %v415_v46  ;;  %vm1353_vm15 = vcmp.gt.f32.partialorder %v1055_v49, 0.0  ;;  %608 = vst [vmem:[#allocation10 + $0x88] sm:$0xff] %v1055_v49 }
  0x5d   :  { %v385_v62 = vmul.f32 0.01, %v129_v41  ;;  %v162_v63 = vmul.f32 0.1, %v66_v44  ;;  %575 = vst [vmem:[#allocation8 + $0x80] sm:$0xff] %v447_v61  ;;  %v416_v0 = vadd.f32 %v384_v43, %v352_v54  ;;  %v1064_v1 = vadd.f32 %v193_v55, %v161_v50  ;;  %v99_v5 = vld [vmem:[#allocation5 + $0xa0] sm:$0xff] }
  0x5e   :  { %v353_v3 = vsub.f32 %v289_v56, %v321_v57  ;;  %v194_v4 = vmul.f32 0.995, %v98_v51  ;;  %v131_v6 = vld [vmem:[%s1346_s2 + $0xa0] sm:$0xff]  ;;  %v290_v11 = vmul.f32 0.995, %v66_v44  ;;  %v100_v20 = vld [vmem:[#allocation5 + $0xa8] sm:$0xff] }
  0x5f   :  { %v322_v12 = vmul.f32 0.1, %v98_v51  ;;  %v386_v13 = vmul.f32 0.01, %v130_v52  ;;  %v448_v14 = vsel %vm1353_vm15, 0.0, %v416_v0  ;;  %vm1354_vm14 = vcmp.gt.f32.partialorder %v1064_v1, 0.0 }
  0x60   :  { %v417_v15 = vadd.f32 %v385_v62, %v353_v3  ;;  %609 = vst [vmem:[#allocation10 + $0x90] sm:$0xff] %v1064_v1  ;;  %v1073_v16 = vadd.f32 %v194_v4, %v162_v63  ;;  %v132_v21 = vld [vmem:[%s1346_s2 + $0xa8] sm:$0xff]  ;;  %v69_v23 = vld [vmem:[#allocation2 + $0xb0] sm:$0xff]  ;;  %576 = vst [vmem:[#allocation8 + $0x88] sm:$0xff] %v448_v14  ;;  %v163_v25 = vmul.f32 0.1, %v67_v58 }
  0x61   :  { %v354_v24 = vsub.f32 %v290_v11, %v322_v12  ;;  %v195_v26 = vmul.f32 0.995, %v99_v5  ;;  %v291_v27 = vmul.f32 0.995, %v67_v58  ;;  %v323_v29 = vmul.f32 0.1, %v99_v5 }
  0x62   :  { %v449_v28 = vsel %vm1354_vm14, 0.0, %v417_v15  ;;  %vm1355_vm15 = vcmp.gt.f32.partialorder %v1073_v16, 0.0  ;;  %610 = vst [vmem:[#allocation10 + $0x98] sm:$0xff] %v1073_v16  ;;  %v387_v31 = vmul.f32 0.01, %v131_v6  ;;  %v101_v39 = vld [vmem:[#allocation5 + $0xb0] sm:$0xff] }
  0x63   :  { %577 = vst [vmem:[#allocation8 + $0x90] sm:$0xff] %v449_v28  ;;  %v418_v32 = vadd.f32 %v386_v13, %v354_v24  ;;  %v1082_v34 = vadd.f32 %v195_v26, %v163_v25  ;;  %v164_v36 = vmul.f32 0.1, %v68_v8  ;;  %v196_v37 = vmul.f32 0.995, %v100_v20  ;;  %v133_v40 = vld [vmem:[%s1346_s2 + $0xb0] sm:$0xff] }
  0x64   :  { %v355_v41 = vsub.f32 %v291_v27, %v323_v29  ;;  %v292_v42 = vmul.f32 0.995, %v68_v8  ;;  %v324_v43 = vmul.f32 0.1, %v100_v20  ;;  %v388_v44 = vmul.f32 0.01, %v132_v21 }
  0x65   :  { %v450_v45 = vsel %vm1355_vm15, 0.0, %v418_v32  ;;  %vm1356_vm14 = vcmp.gt.f32.partialorder %v1082_v34, 0.0  ;;  %611 = vst [vmem:[#allocation10 + $0xa0] sm:$0xff] %v1082_v34  ;;  %v1091_v46 = vadd.f32 %v196_v37, %v164_v36  ;;  %v165_v50 = vmul.f32 0.1, %v69_v23  ;;  %v70_v51 = vld [vmem:[#allocation2 + $0xb8] sm:$0xff] }
  0x66   :  { %578 = vst [vmem:[#allocation8 + $0x98] sm:$0xff] %v450_v45  ;;  %v419_v52 = vadd.f32 %v387_v31, %v355_v41  ;;  %v356_v54 = vsub.f32 %v292_v42, %v324_v43  ;;  %v197_v55 = vmul.f32 0.995, %v101_v39  ;;  %v293_v56 = vmul.f32 0.995, %v69_v23  ;;  %v102_v57 = vld [vmem:[#allocation5 + $0xb8] sm:$0xff] }
  0x67   :  { %v134_v58 = vld [vmem:[%s1346_s2 + $0xb8] sm:$0xff]  ;;  %vm1357_vm15 = vcmp.gt.f32.partialorder %v1091_v46, 0.0  ;;  %612 = vst [vmem:[#allocation10 + $0xa8] sm:$0xff] %v1091_v46  ;;  %v325_v61 = vmul.f32 0.1, %v101_v39  ;;  %v71_v63 = vld [vmem:[#allocation2 + $0xc0] sm:$0xff] }
  0x68   :  { %v389_v62 = vmul.f32 0.01, %v133_v40  ;;  %v451_v0 = vsel %vm1356_vm14, 0.0, %v419_v52  ;;  %v420_v3 = vadd.f32 %v388_v44, %v356_v54  ;;  %v1100_v4 = vadd.f32 %v197_v55, %v165_v50  ;;  %v103_v6 = vld [vmem:[#allocation5 + $0xc0] sm:$0xff]  ;;  %v72_v15 = vld [vmem:[#allocation2 + $0xc8] sm:$0xff]  ;;  %v73_v31 = vld [vmem:[#allocation2 + $0xd0] sm:$0xff] }
  0x69   :  { %v166_v5 = vmul.f32 0.1, %v70_v51  ;;  %v135_v8 = vld [vmem:[%s1346_s2 + $0xc0] sm:$0xff]  ;;  %579 = vst [vmem:[#allocation8 + $0xa0] sm:$0xff] %v451_v0  ;;  %v357_v11 = vsub.f32 %v293_v56, %v325_v61  ;;  %v198_v12 = vmul.f32 0.995, %v102_v57 }
  0x6a   :  { %v294_v13 = vmul.f32 0.995, %v70_v51  ;;  %v326_v14 = vmul.f32 0.1, %v102_v57  ;;  %v452_v20 = vsel %vm1357_vm15, 0.0, %v420_v3  ;;  %vm1358_vm14 = vcmp.gt.f32.partialorder %v1100_v4, 0.0 }
  0x6b   :  { %613 = vst [vmem:[#allocation10 + $0xb0] sm:$0xff] %v1100_v4  ;;  %v390_v21 = vmul.f32 0.01, %v134_v58  ;;  %v167_v23 = vmul.f32 0.1, %v71_v63  ;;  %580 = vst [vmem:[#allocation8 + $0xa8] sm:$0xff] %v452_v20  ;;  %v421_v24 = vadd.f32 %v389_v62, %v357_v11  ;;  %v1109_v25 = vadd.f32 %v198_v12, %v166_v5 }
  0x6c   :  { %v358_v26 = vsub.f32 %v294_v13, %v326_v14  ;;  %v199_v27 = vmul.f32 0.995, %v103_v6  ;;  %v104_v28 = vld [vmem:[#allocation5 + $0xc8] sm:$0xff]  ;;  %v295_v32 = vmul.f32 0.995, %v71_v63  ;;  %v105_v42 = vld [vmem:[#allocation5 + $0xd0] sm:$0xff] }
  0x6d   :  { %v136_v29 = vld [vmem:[%s1346_s2 + $0xc8] sm:$0xff]  ;;  %v327_v36 = vmul.f32 0.1, %v103_v6  ;;  %v391_v37 = vmul.f32 0.01, %v135_v8  ;;  %v453_v39 = vsel %vm1358_vm14, 0.0, %v421_v24 }
  0x6e   :  { %vm1359_vm15 = vcmp.gt.f32.partialorder %v1109_v25, 0.0  ;;  %v422_v40 = vadd.f32 %v390_v21, %v358_v26  ;;  %614 = vst [vmem:[#allocation10 + $0xb8] sm:$0xff] %v1109_v25  ;;  %v1118_v41 = vadd.f32 %v199_v27, %v167_v23  ;;  %v137_v43 = vld [vmem:[%s1346_s2 + $0xd0] sm:$0xff]  ;;  %v74_v44 = vld [vmem:[#allocation2 + $0xd8] sm:$0xff]  ;;  %581 = vst [vmem:[#allocation8 + $0xb0] sm:$0xff] %v453_v39  ;;  %s1247_s12 = sshll.u32 %s837_s11, 4  ;;  %s629_s12 = int_to_ptr.vmem [resolvable:$true] %s1247_s12 }
  0x6f   :  { %v359_v45 = vsub.f32 %v295_v32, %v327_v36  ;;  %v168_v50 = vmul.f32 0.1, %v72_v15  ;;  %v200_v51 = vmul.f32 0.995, %v104_v28  ;;  %v296_v52 = vmul.f32 0.995, %v72_v15 }
  0x70   :  { %v454_v54 = vsel %vm1359_vm15, 0.0, %v422_v40  ;;  %vm1360_vm14 = vcmp.gt.f32.partialorder %v1118_v41, 0.0  ;;  %615 = vst [vmem:[#allocation10 + $0xc0] sm:$0xff] %v1118_v41  ;;  %v328_v55 = vmul.f32 0.1, %v104_v28  ;;  %v106_v63 = vld [vmem:[#allocation5 + $0xd8] sm:$0xff] }
  0x71   :  { %v392_v56 = vmul.f32 0.01, %v136_v29  ;;  %582 = vst [vmem:[#allocation8 + $0xb8] sm:$0xff] %v454_v54  ;;  %v423_v57 = vadd.f32 %v391_v37, %v359_v45  ;;  %v1127_v58 = vadd.f32 %v200_v51, %v168_v50  ;;  %v169_v61 = vmul.f32 0.1, %v73_v31  ;;  %v138_v0 = vld [vmem:[%s1346_s2 + $0xd8] sm:$0xff] }
  0x72   :  { %v201_v62 = vmul.f32 0.995, %v105_v42  ;;  %v360_v3 = vsub.f32 %v296_v52, %v328_v55  ;;  %v297_v5 = vmul.f32 0.995, %v73_v31  ;;  %v329_v6 = vmul.f32 0.1, %v105_v42 }
  0x73   :  { %v393_v8 = vmul.f32 0.01, %v137_v43  ;;  %v455_v11 = vsel %vm1360_vm14, 0.0, %v423_v57  ;;  %vm264_vm15 = vcmp.gt.f32.partialorder %v1127_v58, 0.0  ;;  %616 = vst [vmem:[#allocation10 + $0xc8] sm:$0xff] %v1127_v58  ;;  %v75_v14 = vld [vmem:[#allocation2 + $0xe0] sm:$0xff] }
  0x74   :  { %v1136_v12 = vadd.f32 %v201_v62, %v169_v61  ;;  %v170_v13 = vmul.f32 0.1, %v74_v44  ;;  %583 = vst [vmem:[#allocation8 + $0xc0] sm:$0xff] %v455_v11  ;;  %v424_v15 = vadd.f32 %v392_v56, %v360_v3  ;;  %v361_v20 = vsub.f32 %v297_v5, %v329_v6  ;;  %v107_v24 = vld [vmem:[#allocation5 + $0xe0] sm:$0xff]  ;;  %v76_v29 = vld [vmem:[#allocation2 + $0xe8] sm:$0xff]  ;;  %v77_v61 = vld [vmem:[#allocation2 + $0xf0] sm:$0xff] }
  0x75   :  { %v202_v21 = vmul.f32 0.995, %v106_v63  ;;  %v298_v23 = vmul.f32 0.995, %v74_v44  ;;  %v139_v26 = vld [vmem:[%s1346_s2 + $0xe0] sm:$0xff]  ;;  %v108_v39 = vld [vmem:[#allocation5 + $0xe8] sm:$0xff] }
  0x76   :  { %vm1362_vm14 = vcmp.gt.f32.partialorder %v1136_v12, 0.0  ;;  %617 = vst [vmem:[#allocation10 + $0xd0] sm:$0xff] %v1136_v12  ;;  %v330_v27 = vmul.f32 0.1, %v106_v63  ;;  %v394_v28 = vmul.f32 0.01, %v138_v0  ;;  %v425_v32 = vadd.f32 %v393_v8, %v361_v20 }
  0x77   :  { %v456_v31 = vsel %vm264_vm15, 0.0, %v424_v15  ;;  %v1145_v36 = vadd.f32 %v202_v21, %v170_v13  ;;  %v171_v37 = vmul.f32 0.1, %v75_v14  ;;  %v140_v40 = vld [vmem:[%s1346_s2 + $0xe8] sm:$0xff]  ;;  %v203_v43 = vmul.f32 0.995, %v107_v24 }
  0x78   :  { %584 = vst [vmem:[#allocation8 + $0xc8] sm:$0xff] %v456_v31  ;;  %v362_v42 = vsub.f32 %v298_v23, %v330_v27  ;;  %v299_v44 = vmul.f32 0.995, %v75_v14  ;;  %v331_v45 = vmul.f32 0.1, %v107_v24  ;;  %v457_v50 = vsel %vm1362_vm14, 0.0, %v425_v32 }
  0x79   :  { %vm1363_vm13 = vcmp.gt.f32.partialorder %v1145_v36, 0.0  ;;  %618 = vst [vmem:[#allocation10 + $0xd8] sm:$0xff] %v1145_v36  ;;  %v395_v51 = vmul.f32 0.01, %v139_v26  ;;  %v172_v52 = vmul.f32 0.1, %v76_v29  ;;  %v1154_v55 = vadd.f32 %v203_v43, %v171_v37 }
  0x7a   :  { %585 = vst [vmem:[#allocation8 + $0xd0] sm:$0xff] %v457_v50  ;;  %v426_v54 = vadd.f32 %v394_v28, %v362_v42  ;;  %v363_v56 = vsub.f32 %v299_v44, %v331_v45  ;;  %v204_v57 = vmul.f32 0.995, %v108_v39  ;;  %v109_v62 = vld [vmem:[#allocation5 + $0xf0] sm:$0xff]  ;;  %v300_v0 = vmul.f32 0.995, %v76_v29 }
  0x7b   :  { %v141_v63 = vld [vmem:[%s1346_s2 + $0xf0] sm:$0xff]  ;;  %v332_v3 = vmul.f32 0.1, %v108_v39  ;;  %v396_v5 = vmul.f32 0.01, %v140_v40  ;;  %vm1364_vm14 = vcmp.gt.f32.partialorder %v1154_v55, 0.0 }
  0x7c   :  { %v458_v6 = vsel %vm1363_vm13, 0.0, %v426_v54  ;;  %v427_v8 = vadd.f32 %v395_v51, %v363_v56  ;;  %619 = vst [vmem:[#allocation10 + $0xe0] sm:$0xff] %v1154_v55  ;;  %v1163_v11 = vadd.f32 %v204_v57, %v172_v52  ;;  %v78_v13 = vld [vmem:[#allocation2 + $0xf8] sm:$0xff]  ;;  %v173_v21 = vmul.f32 0.1, %v77_v61 }
  0x7d   :  { %v110_v14 = vld [vmem:[#allocation5 + $0xf8] sm:$0xff]  ;;  %586 = vst [vmem:[#allocation8 + $0xd8] sm:$0xff] %v458_v6  ;;  %v364_v20 = vsub.f32 %v300_v0, %v332_v3  ;;  %v205_v23 = vmul.f32 0.995, %v109_v62  ;;  %v301_v24 = vmul.f32 0.995, %v77_v61 }
  0x7e   :  { %v142_v15 = vld [vmem:[%s1346_s2 + $0xf8] sm:$0xff]  ;;  %v459_v26 = vsel %vm1364_vm14, 0.0, %v427_v8  ;;  %vm1365_vm13 = vcmp.gt.f32.partialorder %v1163_v11, 0.0  ;;  %620 = vst [vmem:[#allocation10 + $0xe8] sm:$0xff] %v1163_v11  ;;  %v333_v27 = vmul.f32 0.1, %v109_v62 }
  0x7f   :  { %v397_v28 = vmul.f32 0.01, %v141_v63  ;;  %587 = vst [vmem:[#allocation8 + $0xe0] sm:$0xff] %v459_v26  ;;  %v428_v29 = vadd.f32 %v396_v5, %v364_v20  ;;  %v1172_v31 = vadd.f32 %v205_v23, %v173_v21  ;;  %v174_v32 = vmul.f32 0.1, %v78_v13  ;;  %s835_s2 = smov [#allocation8]  }
  0x80   :  { %v206_v37 = vmul.f32 0.995, %v110_v14  ;;  %v365_v39 = vsub.f32 %v301_v24, %v333_v27  ;;  %v302_v40 = vmul.f32 0.995, %v78_v13  ;;  %v334_v42 = vmul.f32 0.1, %v110_v14 }
  0x81   :  { %v398_v43 = vmul.f32 0.01, %v142_v15  ;;  %v460_v44 = vsel %vm1365_vm13, 0.0, %v428_v29  ;;  %vm269_vm14 = vcmp.gt.f32.partialorder %v1172_v31, 0.0  ;;  %621 = vst [vmem:[#allocation10 + $0xf0] sm:$0xff] %v1172_v31  ;;  %v834_v50 = vmov 0.0  }
  0x82   :  { %v1178_v45 = vadd.f32 %v206_v37, %v174_v32  ;;  %v672_v51 = vsel %vm239_vm0, 1.0, %v834_v50  ;;  %588 = vst [vmem:[#allocation8 + $0xe8] sm:$0xff] %v460_v44  ;;  %v429_v52 = vadd.f32 %v397_v28, %v365_v39  ;;  %v366_v54 = vsub.f32 %v302_v40, %v334_v42  ;;  %s640_s8 = sshll.u32 %s835_s2, 4  ;;  %s1220_s8 = int_to_ptr.vmem [resolvable:$true] %s640_s8 }
  0x83   :  { %527 = vst [vmem:[#allocation7] sm:$0xff] %v672_v51  ;;  %v673_v56 = vsel %vm240_vm1, 1.0, %v834_v50  ;;  %v674_v57 = vsel %vm241_vm2, 1.0, %v834_v50  ;;  %v675_v10 = vsel %vm242_vm3, 1.0, %v834_v50  ;;  %v676_v19 = vsel %vm243_vm4, 1.0, %v834_v50  ;;  %s756_s13 = scalar_lea.vmem %s1220_s8, 4096  ;;  %p761_p3 = scmp.lt.s32.totalorder %s1220_s8, %s1220_s8 }
  0x84   :  { %vm270_vm13 = vcmp.gt.f32.partialorder %v1178_v45, 0.0  ;;  %622 = vst [vmem:[#allocation10 + $0xf8] sm:$0xff] %v1178_v45  ;;  %528 = vst [vmem:[#allocation7 + $0x8] sm:$0xff] %v673_v56  ;;  %v677_v35 = vsel %vm244_vm5, 1.0, %v834_v50  ;;  %v461_v61 = vsel %vm269_vm14, 0.0, %v429_v52  ;;  %v430_v62 = vadd.f32 %v398_v43, %v366_v54  ;;  %p757_p2 = scmp.ne.s32.totalorder %s1220_s8, %s756_s13  ;;  %p762_p4 = scmp.lt.s32.totalorder %s756_s13, %s756_s13 }
  0x85   :  { %529 = vst [vmem:[#allocation7 + $0x10] sm:$0xff] %v674_v57  ;;  %530 = vst [vmem:[#allocation7 + $0x18] sm:$0xff] %v675_v10  ;;  %v678_v48 = vsel %vm245_vm6, 1.0, %v834_v50  ;;  %v679_v59 = vsel %vm246_vm7, 1.0, %v834_v50  ;;  %v680_v7 = vsel %vm247_vm8, 1.0, %v834_v50  ;;  %v681_v63 = vsel %vm248_vm9, 1.0, %v834_v50 }
  0x86   :  { %531 = vst [vmem:[#allocation7 + $0x20] sm:$0xff] %v676_v19  ;;  %532 = vst [vmem:[#allocation7 + $0x28] sm:$0xff] %v677_v35  ;;  %v682_v18 = vsel %vm249_vm10, 1.0, %v834_v50  ;;  %v683_v33 = vsel %vm250_vm11, 1.0, %v834_v50  ;;  %v462_v0 = vsel %vm270_vm13, 0.0, %v430_v62  ;;  %v684_v47 = vsel %vm251_vm12, 1.0, %v834_v50  ;;  %p763_p5 = por %p762_p4, %p761_p3 }
  0x87   :  { %589 = vst [vmem:[#allocation8 + $0xf0] sm:$0xff] %v461_v61  ;;  %533 = vst [vmem:[#allocation7 + $0x30] sm:$0xff] %v678_v48  ;;  %vm1366_vm0 = vcmp.gt.f32.partialorder %v1019_v53, 0.0  ;;  %vm1367_vm1 = vcmp.gt.f32.partialorder %v1028_v2, 0.0  ;;  %vm1368_vm2 = vcmp.gt.f32.partialorder %v1037_v17, 0.0  ;;  %vm1369_vm3 = vcmp.gt.f32.partialorder %v1046_v30, 0.0 }
  0x88   :  { %534 = vst [vmem:[#allocation7 + $0x38] sm:$0xff] %v679_v59  ;;  %535 = vst [vmem:[#allocation7 + $0x40] sm:$0xff] %v680_v7  ;;  %v685_v60 = vsel %vm1366_vm0, 1.0, %v834_v50  ;;  %v686_v9 = vsel %vm1367_vm1, 1.0, %v834_v50  ;;  %v687_v22 = vsel %vm1368_vm2, 1.0, %v834_v50  ;;  %v688_v38 = vsel %vm1369_vm3, 1.0, %v834_v50  ;;  %p764_p6 = pnand %p763_p5, %p757_p2 }
  0x89   :  { %536 = vst [vmem:[#allocation7 + $0x48] sm:$0xff] %v681_v63  ;;  %537 = vst [vmem:[#allocation7 + $0x50] sm:$0xff] %v682_v18  ;;  %vm1370_vm4 = vcmp.gt.f32.partialorder %v1055_v49, 0.0  ;;  %vm1371_vm5 = vcmp.gt.f32.partialorder %v1064_v1, 0.0  ;;  %vm1372_vm6 = vcmp.gt.f32.partialorder %v1073_v16, 0.0  ;;  %vm1373_vm7 = vcmp.gt.f32.partialorder %v1082_v34, 0.0 }
  0x8a   :  { %538 = vst [vmem:[#allocation7 + $0x58] sm:$0xff] %v683_v33  ;;  %590 = vst [vmem:[#allocation8 + $0xf8] sm:$0xff] %v462_v0  ;;  %v689_v53 = vsel %vm1370_vm4, 1.0, %v834_v50  ;;  %v690_v2 = vsel %vm1371_vm5, 1.0, %v834_v50  ;;  %v691_v17 = vsel %vm1372_vm6, 1.0, %v834_v50  ;;  %v692_v30 = vsel %vm1373_vm7, 1.0, %v834_v50 }
  0x8b   :  { %539 = vst [vmem:[#allocation7 + $0x60] sm:$0xff] %v684_v47  ;;  %540 = vst [vmem:[#allocation7 + $0x68] sm:$0xff] %v685_v60  ;;  %vm1374_vm8 = vcmp.gt.f32.partialorder %v1091_v46, 0.0  ;;  %vm1375_vm9 = vcmp.gt.f32.partialorder %v1100_v4, 0.0 }
  0x8c   :  { %541 = vst [vmem:[#allocation7 + $0x70] sm:$0xff] %v686_v9  ;;  %542 = vst [vmem:[#allocation7 + $0x78] sm:$0xff] %v687_v22  ;;  %v693_v49 = vsel %vm1374_vm8, 1.0, %v834_v50  ;;  %v694_v1 = vsel %vm1375_vm9, 1.0, %v834_v50 }
  0x8d   :  { %543 = vst [vmem:[#allocation7 + $0x80] sm:$0xff] %v688_v38  ;;  %544 = vst [vmem:[#allocation7 + $0x88] sm:$0xff] %v689_v53 }
  0x8e   :  { %545 = vst [vmem:[#allocation7 + $0x90] sm:$0xff] %v690_v2 }
  0x8f   :  { %767 = shalt.err (!%p764_p6)
}
  0x90   :  { %s768_s16 = scalar_lea.hbm %s1348_s4, 4096 }
  0x91   :  { %p769_p7 = scmp.ne.s32.totalorder %s1348_s4, %s768_s16  ;;  %p772_p8 = scmp.lt.u32.totalorder %s768_s16, %s1348_s4 }
  0x93   :  { %p774_p9 = pnand %p772_p8, %p769_p7 }
  0x95   :  { %777 = shalt.err (!%p774_p9)
}
  0x96   :  { %646 = dma.vmem_to_hbm [thread:$0]  %s1220_s8, 4096, %s1348_s4, [#allocation9], %s831_s28, %s831_s28, %s832_s29   ;;  %546 = vst [vmem:[#allocation7 + $0x98] sm:$0xff] %v691_v17  ;;  %547 = vst [vmem:[#allocation7 + $0xa0] sm:$0xff] %v692_v30  ;;  %vm1376_vm10 = vcmp.gt.f32.partialorder %v1109_v25, 0.0  ;;  %vm1377_vm11 = vcmp.gt.f32.partialorder %v1118_v41, 0.0 }
  0x97   :  { %548 = vst [vmem:[#allocation7 + $0xa8] sm:$0xff] %v693_v49  ;;  %549 = vst [vmem:[#allocation7 + $0xb0] sm:$0xff] %v694_v1  ;;  %v695_v16 = vsel %vm1376_vm10, 1.0, %v834_v50  ;;  %v696_v34 = vsel %vm1377_vm11, 1.0, %v834_v50  ;;  %v697_v46 = vsel %vm264_vm15, 1.0, %v834_v50  ;;  %vm1378_vm12 = vcmp.gt.f32.partialorder %v1136_v12, 0.0  ;;  %p783_p11 = scmp.lt.s32.totalorder %s1233_s10, %s1233_s10 }
  0x98   :  { %v698_v4 = vsel %vm1378_vm12, 1.0, %v834_v50  ;;  %s778_s4 = scalar_lea.vmem %s1233_s10, 4096 }
  0x99   :  { %p779_p10 = scmp.ne.s32.totalorder %s1233_s10, %s778_s4  ;;  %p784_p12 = scmp.lt.s32.totalorder %s778_s4, %s778_s4 }
  0x9b   :  { %p785_p13 = por %p784_p12, %p783_p11 }
  0x9d   :  { %p786_p0 = pnand %p785_p13, %p779_p10 }
  0x9f   :  { %789 = shalt.err (!%p786_p0)
}
  0xa0   :  { %s790_s23 = scalar_lea.hbm %s1349_s5, 4096 }
  0xa1   :  { %p791_p1 = scmp.ne.s32.totalorder %s1349_s5, %s790_s23  ;;  %p794_p2 = scmp.lt.u32.totalorder %s790_s23, %s1349_s5 }
  0xa3   :  { %p796_p3 = pnand %p794_p2, %p791_p1 }
  0xa5   :  { %799 = shalt.err (!%p796_p3)
}
  0xa6   :  { %658 = dma.vmem_to_hbm [thread:$0]  %s1233_s10, 4096, %s1349_s5, [#allocation9], %s831_s28, %s831_s28, %s832_s29   ;;  %550 = vst [vmem:[#allocation7 + $0xb8] sm:$0xff] %v695_v16  ;;  %551 = vst [vmem:[#allocation7 + $0xc0] sm:$0xff] %v696_v34  ;;  %vm1379_vm15 = vcmp.gt.f32.partialorder %v1145_v36, 0.0  ;;  %vm1380_vm0 = vcmp.gt.f32.partialorder %v1154_v55, 0.0 }
  0xa7   :  { %552 = vst [vmem:[#allocation7 + $0xc8] sm:$0xff] %v697_v46  ;;  %553 = vst [vmem:[#allocation7 + $0xd0] sm:$0xff] %v698_v4  ;;  %v699_v25 = vsel %vm1379_vm15, 1.0, %v834_v50  ;;  %v700_v41 = vsel %vm1380_vm0, 1.0, %v834_v50  ;;  %vm1381_vm1 = vcmp.gt.f32.partialorder %v1163_v11, 0.0  ;;  %v702_v12 = vsel %vm269_vm14, 1.0, %v834_v50  ;;  %p805_p5 = scmp.lt.s32.totalorder %s629_s12, %s629_s12 }
  0xa8   :  { %v701_v58 = vsel %vm1381_vm1, 1.0, %v834_v50  ;;  %554 = vst [vmem:[#allocation7 + $0xd8] sm:$0xff] %v699_v25  ;;  %555 = vst [vmem:[#allocation7 + $0xe0] sm:$0xff] %v700_v41  ;;  %v703_v36 = vsel %vm270_vm13, 1.0, %v834_v50  ;;  %s800_s5 = scalar_lea.vmem %s629_s12, 4096 }
  0xa9   :  { %556 = vst [vmem:[#allocation7 + $0xe8] sm:$0xff] %v701_v58  ;;  %557 = vst [vmem:[#allocation7 + $0xf0] sm:$0xff] %v702_v12  ;;  %p801_p4 = scmp.ne.s32.totalorder %s629_s12, %s800_s5  ;;  %p806_p6 = scmp.lt.s32.totalorder %s800_s5, %s800_s5 }
  0xaa   :  { %558 = vst [vmem:[#allocation7 + $0xf8] sm:$0xff] %v703_v36 }
  0xab   :  { %p807_p7 = por %p806_p6, %p805_p5 }
  0xad   :  { %p808_p8 = pnand %p807_p7, %p801_p4 }
  0xaf   :  { %811 = shalt.err (!%p808_p8)
}
  0xb0   :  { %s812_s8 = scalar_lea.hbm %s1347_s3, 4096 }
  0xb1   :  { %p813_p9 = scmp.ne.s32.totalorder %s1347_s3, %s812_s8  ;;  %p816_p10 = scmp.lt.u32.totalorder %s812_s8, %s1347_s3 }
  0xb3   :  { %p818_p11 = pnand %p816_p10, %p813_p9 }
  0xb5   :  { %821 = shalt.err (!%p818_p11)
}
  0xb6   :  { %634 = dma.vmem_to_hbm [thread:$0]  %s629_s12, 4096, %s1347_s3, [#allocation4], %s831_s28, %s831_s28, %s832_s29  }
  0xb7   :  { %826 = dma.done.wait [#allocation4], 4096  }
  0xb8   :  { %827 = vsyncadd [#allocation4], 4294963200 }
  0xb9   :  { %828 = dma.done.wait [#allocation9], 8192  }
  0xba   :  { %829 = vsyncadd [#allocation9], 4294959104 }
  0xbb   :  { %668 = vsyncpa [#allocation3], 1 }
  0xbc   :  { %669 = vsyncpa [#allocation6], 1 }
  0xbd   :  { %670 = vsyncpa [#allocation4], 1 }
  0xbe   :  { %671 = vsyncpa [#allocation9], 1 }

</bundles_post_ra>
